<compile_context>
chip_gen: v7x
topology: tpu7x:2x2x1
jax: 0.10.0
libtpu: 0.0.40
codegen_flags: <defaults>
</compile_context>

<pallas_src>
import functools

import jax
import jax.numpy as jnp
from jax.experimental import pallas as pl
from jax.experimental.pallas import tpu as pltpu

DIM_LATENT = 100
DIM_IN = DIM_LATENT + 10            # 110 (latent + one-hot label)
DIM_IN_PAD = 128                    # lane-dense K for layer 1
DIM_H = 256
DIM_OUT = 784                       # 28 * 28
DIM_OUT_PAD = 896                   # 7 * 128, lane-dense N for layer 3
TB_MAX = 256                        # batch tile (fills MXU M dim on v6e/v7x)


def _round_up(n, m):
    return ((n + m - 1) // m) * m


def _mlp_kernel(x_ref, w1_ref, b1_ref, w2_ref, b2_ref, w3_ref, b3_ref, o_ref):
    # Biases read once per grid step (f32), implicit (1,N)->(TB,N) broadcast.
    b1 = b1_ref[...]
    b2 = b2_ref[...]
    b3 = b3_ref[...]

    # Layer 1: (TB,128)bf16 @ (128,256)bf16 -> f32, +b, ReLU
    h = jnp.dot(x_ref[...], w1_ref[...], preferred_element_type=jnp.float32)
    h = jnp.maximum(h + b1, 0.0)

    # Layer 2: (TB,256)bf16 @ (256,256)bf16 -> f32, +b, ReLU
    h = jnp.dot(h.astype(jnp.bfloat16), w2_ref[...],
                preferred_element_type=jnp.float32)
    h = jnp.maximum(h + b2, 0.0)

    # Layer 3: (TB,256)bf16 @ (256,896)bf16 -> f32, +b, tanh (f32)
    h = jnp.dot(h.astype(jnp.bfloat16), w3_ref[...],
                preferred_element_type=jnp.float32)
    o_ref[...] = jnp.tanh(h + b3)


@functools.partial(jax.jit, static_argnames=())
def mnist_generator_forward(x, params):
    """x: (B, 110) float32 -> (B, 1, 28, 28) float32."""
    w1, b1, w2, b2, w3, b3 = params
    B = x.shape[0]

    # Batch tile: multiple of 8 sublanes, capped at 256; pad B to a multiple of it.
    TB = min(TB_MAX, _round_up(B, 8))
    B_pad = _round_up(B, TB)
    grid = (B_pad // TB,)

    # Zero-pad batch and feature dims, cast activations to bf16 for the MXU.
    x_pad = jnp.zeros((B_pad, DIM_IN_PAD), jnp.bfloat16)
    x_pad = x_pad.at[:B, :DIM_IN].set(x.astype(jnp.bfloat16))

    resident = lambda shape: pl.BlockSpec(shape, lambda i: (0, 0))

    out = pl.pallas_call(
        _mlp_kernel,
        out_shape=jax.ShapeDtypeStruct((B_pad, DIM_OUT_PAD), jnp.float32),
        grid=grid,
        in_specs=[
            pl.BlockSpec((TB, DIM_IN_PAD), lambda i: (i, 0)),   # x tile
            resident((DIM_IN_PAD, DIM_H)), resident((1, DIM_H)),
            resident((DIM_H, DIM_H)),      resident((1, DIM_H)),
            resident((DIM_H, DIM_OUT_PAD)), resident((1, DIM_OUT_PAD)),
        ],
        out_specs=pl.BlockSpec((TB, DIM_OUT_PAD), lambda i: (i, 0)),
        compiler_params=pltpu.CompilerParams(
            dimension_semantics=("parallel",),      # shards batch across TCs on v7x
            vmem_limit_bytes=16 << 20,              # right-sized; works on v5e/v6e/v7x
        ),
    )(x_pad, w1, b1, w2, b2, w3, b3)

    # Glue: drop batch/feature padding, same as torch `x.reshape(-1, 1, 28, 28)`.
    return out[:B, :DIM_OUT].reshape(-1, 1, 28, 28)


def init_params(key):
    """Deterministic init matching torch.nn.Linear default:
    U(-1/sqrt(fan_in), 1/sqrt(fan_in)) for both weight and bias.
    Weights stored as (in, out) == torch weight.T, zero-padded to lane-dense
    shapes (110->128 rows on W1, 784->896 cols on W3/b3), bf16 weights, f32 biases."""
    logical = [(DIM_IN, DIM_H), (DIM_H, DIM_H), (DIM_H, DIM_OUT)]
    padded = [(DIM_IN_PAD, DIM_H), (DIM_H, DIM_H), (DIM_H, DIM_OUT_PAD)]
    params = []
    for (fi, fo), (pi, po) in zip(logical, padded):
        key, kw, kb = jax.random.split(key, 3)
        bound = 1.0 / jnp.sqrt(jnp.float32(fi))
        w = jax.random.uniform(kw, (fi, fo), jnp.float32, -bound, bound)
        b = jax.random.uniform(kb, (1, fo), jnp.float32, -bound, bound)
        w_pad = jnp.zeros((pi, po), jnp.bfloat16).at[:fi, :fo].set(
            w.astype(jnp.bfloat16))
        b_pad = jnp.zeros((1, po), jnp.float32).at[:, :fo].set(b)
        params += [w_pad, b_pad]
    return tuple(params)


def _reference_forward(x, params):
    """Pure-JAX reference on the same (padded, bf16) parameters."""
    w1, b1, w2, b2, w3, b3 = params
    h = jnp.zeros((x.shape[0], DIM_IN_PAD), jnp.float32).at[:, :DIM_IN].set(x)
    h = jnp.maximum(h @ w1.astype(jnp.float32) + b1, 0.0)
    h = jnp.maximum(h @ w2.astype(jnp.float32) + b2, 0.0)
    h = jnp.tanh(h @ w3.astype(jnp.float32) + b3)
    return h[:, :DIM_OUT].reshape(-1, 1, 28, 28)


if __name__ == "__main__":
    key = jax.random.PRNGKey(0)
    kp, kx = jax.random.split(key)

    params = init_params(kp)

    # Generator input: latent (100) concat one-hot label (10) -> (B, 110).
    B = 2
    x = jax.random.normal(kx, (B, DIM_IN), dtype=jnp.float32)

    y = mnist_generator_forward(x, params)
    y = jax.block_until_ready(y)

    assert y.shape == (B, 1, 28, 28), y.shape
    assert y.dtype == jnp.float32
    # tanh output range sanity check
    assert float(jnp.max(jnp.abs(y))) <= 1.0 + 1e-6
    # numerical check vs pure-JAX reference (bf16 matmul inputs, f32 accumulation)
    y_ref = _reference_forward(x, params)
    assert bool(jnp.allclose(y, y_ref, atol=5e-2, rtol=0)), float(
        jnp.max(jnp.abs(y - y_ref)))

    print("KERNEL_OK")
</pallas_src>

<mosaic_0001>
module attributes {stable_mosaic.version = 11 : i64} {
  func.func @_mlp_kernel(%arg0: i32, %arg1: memref<8x128xbf16, #tpu.memory_space<vmem>>, %arg2: memref<128x256xbf16, #tpu.memory_space<vmem>>, %arg3: memref<1x256xf32, #tpu.memory_space<vmem>>, %arg4: memref<256x256xbf16, #tpu.memory_space<vmem>>, %arg5: memref<1x256xf32, #tpu.memory_space<vmem>>, %arg6: memref<256x896xbf16, #tpu.memory_space<vmem>>, %arg7: memref<1x896xf32, #tpu.memory_space<vmem>>, %arg8: memref<8x896xf32, #tpu.memory_space<vmem>>) attributes {dimension_semantics = [#tpu.dimension_semantics<parallel>], iteration_bounds = array<i64: 1>, scalar_prefetch = 0 : i64, scratch_operands = 0 : i64, tpu.core_type = #tpu.core_type<tc>, window_params = [{transform_indices = @transform_0, window_bounds = array<i64: 8, 128>}, {pipeline_mode = #tpu.pipeline_mode<synchronous>, transform_indices = @transform_1, window_bounds = array<i64: 128, 256>}, {pipeline_mode = #tpu.pipeline_mode<synchronous>, transform_indices = @transform_2, window_bounds = array<i64: 1, 256>}, {pipeline_mode = #tpu.pipeline_mode<synchronous>, transform_indices = @transform_3, window_bounds = array<i64: 256, 256>}, {pipeline_mode = #tpu.pipeline_mode<synchronous>, transform_indices = @transform_4, window_bounds = array<i64: 1, 256>}, {pipeline_mode = #tpu.pipeline_mode<synchronous>, transform_indices = @transform_5, window_bounds = array<i64: 256, 896>}, {pipeline_mode = #tpu.pipeline_mode<synchronous>, transform_indices = @transform_6, window_bounds = array<i64: 1, 896>}, {transform_indices = @transform_7, window_bounds = array<i64: 8, 896>}]} {
    %c0 = arith.constant 0 : index
    %c0_0 = arith.constant 0 : index
    %0 = vector.load %arg3[%c0, %c0_0] : memref<1x256xf32, #tpu.memory_space<vmem>>, vector<1x256xf32>
    %c0_1 = arith.constant 0 : index
    %c0_2 = arith.constant 0 : index
    %1 = vector.load %arg5[%c0_1, %c0_2] : memref<1x256xf32, #tpu.memory_space<vmem>>, vector<1x256xf32>
    %c0_3 = arith.constant 0 : index
    %c0_4 = arith.constant 0 : index
    %2 = vector.load %arg7[%c0_3, %c0_4] : memref<1x896xf32, #tpu.memory_space<vmem>>, vector<1x896xf32>
    %c0_5 = arith.constant 0 : index
    %c0_6 = arith.constant 0 : index
    %3 = vector.load %arg1[%c0_5, %c0_6] : memref<8x128xbf16, #tpu.memory_space<vmem>>, vector<8x128xbf16>
    %c0_7 = arith.constant 0 : index
    %c0_8 = arith.constant 0 : index
    %4 = vector.load %arg2[%c0_7, %c0_8] : memref<128x256xbf16, #tpu.memory_space<vmem>>, vector<128x256xbf16>
    %cst = arith.constant dense<0.000000e+00> : vector<8x256xf32>
    %5 = tpu.matmul %3, %4, %cst {dimension_numbers = #tpu.dot_dimension_numbers<[1], [0], [0], [1], [0, 0, 1, 1], [], []>} : vector<8x128xbf16>, vector<128x256xbf16>, vector<8x256xf32> -> vector<8x256xf32>
    %6 = vector.broadcast %0 : vector<1x256xf32> to vector<8x256xf32>
    %7 = arith.addf %5, %6 : vector<8x256xf32>
    %cst_9 = arith.constant 0.000000e+00 : f32
    %8 = vector.broadcast %cst_9 : f32 to vector<8x256xf32>
    %9 = arith.maximumf %7, %8 : vector<8x256xf32>
    %10 = arith.truncf %9 : vector<8x256xf32> to vector<8x256xbf16>
    %c0_10 = arith.constant 0 : index
    %c0_11 = arith.constant 0 : index
    %11 = vector.load %arg4[%c0_10, %c0_11] : memref<256x256xbf16, #tpu.memory_space<vmem>>, vector<256x256xbf16>
    %cst_12 = arith.constant dense<0.000000e+00> : vector<8x256xf32>
    %12 = tpu.matmul %10, %11, %cst_12 {dimension_numbers = #tpu.dot_dimension_numbers<[1], [0], [0], [1], [0, 0, 1, 1], [], []>} : vector<8x256xbf16>, vector<256x256xbf16>, vector<8x256xf32> -> vector<8x256xf32>
    %13 = vector.broadcast %1 : vector<1x256xf32> to vector<8x256xf32>
    %14 = arith.addf %12, %13 : vector<8x256xf32>
    %cst_13 = arith.constant 0.000000e+00 : f32
    %15 = vector.broadcast %cst_13 : f32 to vector<8x256xf32>
    %16 = arith.maximumf %14, %15 : vector<8x256xf32>
    %17 = arith.truncf %16 : vector<8x256xf32> to vector<8x256xbf16>
    %c0_14 = arith.constant 0 : index
    %c0_15 = arith.constant 0 : index
    %18 = vector.load %arg6[%c0_14, %c0_15] : memref<256x896xbf16, #tpu.memory_space<vmem>>, vector<256x896xbf16>
    %cst_16 = arith.constant dense<0.000000e+00> : vector<8x896xf32>
    %19 = tpu.matmul %17, %18, %cst_16 {dimension_numbers = #tpu.dot_dimension_numbers<[1], [0], [0], [1], [0, 0, 1, 1], [], []>} : vector<8x256xbf16>, vector<256x896xbf16>, vector<8x896xf32> -> vector<8x896xf32>
    %20 = vector.broadcast %2 : vector<1x896xf32> to vector<8x896xf32>
    %21 = arith.addf %19, %20 : vector<8x896xf32>
    %22 = math.tanh %21 : vector<8x896xf32>
    %c0_17 = arith.constant 0 : index
    %c0_18 = arith.constant 0 : index
    %23 = vector.load %arg8[%c0_17, %c0_18] : memref<8x896xf32, #tpu.memory_space<vmem>>, vector<8x896xf32>
    tpu.vector_store %arg8[%c0_17, %c0_18], %22 {strides = array<i32>} : memref<8x896xf32, #tpu.memory_space<vmem>>, vector<8x896xf32>,
    return
  }
  func.func @transform_0(%arg0: i32) -> (i32, i32) {
    %c0_i32 = arith.constant 0 : i32
    %c0_i32_0 = arith.constant 0 : i32
    return %arg0, %c0_i32 : i32, i32
  }
  func.func @transform_1(%arg0: i32) -> (i32, i32) {
    %c0_i32 = arith.constant 0 : i32
    %c0_i32_0 = arith.constant 0 : i32
    %c0_i32_1 = arith.constant 0 : i32
    return %c0_i32, %c0_i32_0 : i32, i32
  }
  func.func @transform_2(%arg0: i32) -> (i32, i32) {
    %c0_i32 = arith.constant 0 : i32
    %c0_i32_0 = arith.constant 0 : i32
    %c0_i32_1 = arith.constant 0 : i32
    return %c0_i32, %c0_i32_0 : i32, i32
  }
  func.func @transform_3(%arg0: i32) -> (i32, i32) {
    %c0_i32 = arith.constant 0 : i32
    %c0_i32_0 = arith.constant 0 : i32
    %c0_i32_1 = arith.constant 0 : i32
    return %c0_i32, %c0_i32_0 : i32, i32
  }
  func.func @transform_4(%arg0: i32) -> (i32, i32) {
    %c0_i32 = arith.constant 0 : i32
    %c0_i32_0 = arith.constant 0 : i32
    %c0_i32_1 = arith.constant 0 : i32
    return %c0_i32, %c0_i32_0 : i32, i32
  }
  func.func @transform_5(%arg0: i32) -> (i32, i32) {
    %c0_i32 = arith.constant 0 : i32
    %c0_i32_0 = arith.constant 0 : i32
    %c0_i32_1 = arith.constant 0 : i32
    return %c0_i32, %c0_i32_0 : i32, i32
  }
  func.func @transform_6(%arg0: i32) -> (i32, i32) {
    %c0_i32 = arith.constant 0 : i32
    %c0_i32_0 = arith.constant 0 : i32
    %c0_i32_1 = arith.constant 0 : i32
    return %c0_i32, %c0_i32_0 : i32, i32
  }
  func.func @transform_7(%arg0: i32) -> (i32, i32) {
    %c0_i32 = arith.constant 0 : i32
    %c0_i32_0 = arith.constant 0 : i32
    return %arg0, %c0_i32 : i32, i32
  }
}

</mosaic_0001>

<bundles_post_ra>
// kernel: mnist_generator_forward.1
= control target key start
LH: loop header
LB: loop body
LE: loop exit
PB: predicated region body
PF: predicated region fallthrough
CT: control target
= control target key end

     0   :  { %12 = vsyncpa [#allocation3], 0  ;;  %s2050_s0 = inlined_call_operand.vmem [shape: bf16[8,128], index: 0, kind: input, shape index: {}]   ;;  %s2051_s1 = inlined_call_operand.hbm [shape: bf16[128,256], index: 1, kind: input, shape index: {}]   ;;  %s2052_s2 = inlined_call_operand.vmem [shape: f32[1,256], index: 2, kind: input, shape index: {}]   ;;  %s2053_s3 = inlined_call_operand.hbm [shape: bf16[256,256], index: 3, kind: input, shape index: {}]   ;;  %s2054_s4 = inlined_call_operand.vmem [shape: f32[1,256], index: 4, kind: input, shape index: {}]   ;;  %s2055_s5 = inlined_call_operand.hbm [shape: bf16[256,896], index: 5, kind: input, shape index: {}]   ;;  %s2056_s6 = inlined_call_operand.vmem [shape: f32[1,896], index: 6, kind: input, shape index: {}]   ;;  %s2057_s7 = inlined_call_operand.vmem [shape: f32[8,896], index: 7, kind: output, shape index: {}]  }
   0x1   :  { %13 = vsyncpa [#allocation5], 0  ;;  %s1901_s24 = smov [#allocation4]   ;;  %s1902_s26 = smov [#allocation2]  }
   0x2   :  { %s35_s25 = sshll.u32 %s1901_s24, 4  ;;  %s21_s27 = sshll.u32 %s1902_s26, 4  ;;  %s36_s25 = int_to_ptr.vmem [resolvable:$true] %s35_s25  ;;  %s1949_s27 = int_to_ptr.vmem [resolvable:$true] %s21_s27 }
   0x3   :  { %s1831_s30 = scalar_lea.hbm %s2053_s3, 4096 }
   0x4   :  { %p1832_p0 = scmp.ne.s32.totalorder %s2053_s3, %s1831_s30  ;;  %p1835_p1 = scmp.lt.u32.totalorder %s1831_s30, %s2053_s3 }
   0x6   :  { %p1837_p2 = pnand %p1835_p1, %p1832_p0 }
   0x8   :  { %1840 = shalt.err (!%p1837_p2)
}
   0x9   :  { %s1841_s12 = scalar_lea.vmem %s36_s25, 4096  ;;  %p1846_p4 = scmp.lt.s32.totalorder %s36_s25, %s36_s25 }
   0xa   :  { %p1842_p3 = scmp.ne.s32.totalorder %s36_s25, %s1841_s12  ;;  %p1847_p5 = scmp.lt.s32.totalorder %s1841_s12, %s1841_s12 }
   0xc   :  { %p1848_p6 = por %p1847_p5, %p1846_p4 }
   0xe   :  { %p1849_p7 = pnand %p1848_p6, %p1842_p3 }
  0x10   :  { %1852 = shalt.err (!%p1849_p7)
}
  0x11   :  { %s1903_s13 = smov 128   ;;  %s1904_s14 = smov 8  }
  0x12   :  { %41 = dma.hbm_to_vmem [thread:$0]  %s2053_s3, 4096, %s36_s25, [#allocation5], %s1903_s13, %s1903_s13, %s1904_s14  }
  0x13   :  { %s1853_s19 = scalar_lea.hbm %s2051_s1, 2048 }
  0x14   :  { %p1854_p8 = scmp.ne.s32.totalorder %s2051_s1, %s1853_s19  ;;  %p1857_p9 = scmp.lt.u32.totalorder %s1853_s19, %s2051_s1 }
  0x16   :  { %p1859_p10 = pnand %p1857_p9, %p1854_p8 }
  0x18   :  { %1862 = shalt.err (!%p1859_p10)
}
  0x19   :  { %s1863_s24 = scalar_lea.vmem %s1949_s27, 2048  ;;  %p1868_p12 = scmp.lt.s32.totalorder %s1949_s27, %s1949_s27 }
  0x1a   :  { %p1864_p11 = scmp.ne.s32.totalorder %s1949_s27, %s1863_s24  ;;  %p1869_p13 = scmp.lt.s32.totalorder %s1863_s24, %s1863_s24 }
  0x1c   :  { %p1870_p0 = por %p1869_p13, %p1868_p12 }
  0x1e   :  { %p1871_p1 = pnand %p1870_p0, %p1864_p11 }
  0x20   :  { %1874 = shalt.err (!%p1871_p1)
}
  0x21   :  { %27 = dma.hbm_to_vmem [thread:$0]  %s2051_s1, 2048, %s1949_s27, [#allocation3], %s1903_s13, %s1903_s13, %s1904_s14  }
  0x22   :  { %s1905_s26 = smov [#allocation6]   ;;  %s1875_s8 = scalar_lea.hbm %s2055_s5, 14336 }
  0x23   :  { %s49_s28 = sshll.u32 %s1905_s26, 4  ;;  %p1876_p2 = scmp.ne.s32.totalorder %s2055_s5, %s1875_s8  ;;  %s50_s28 = int_to_ptr.vmem [resolvable:$true] %s49_s28 }
  0x24   :  { %p1879_p3 = scmp.lt.u32.totalorder %s1875_s8, %s2055_s5 }
  0x26   :  { %p1881_p4 = pnand %p1879_p3, %p1876_p2 }
  0x28   :  { %1884 = shalt.err (!%p1881_p4)
}
  0x29   :  { %s1885_s15 = scalar_lea.vmem %s50_s28, 14336  ;;  %p1890_p6 = scmp.lt.s32.totalorder %s50_s28, %s50_s28 }
  0x2a   :  { %p1886_p5 = scmp.ne.s32.totalorder %s50_s28, %s1885_s15  ;;  %p1891_p7 = scmp.lt.s32.totalorder %s1885_s15, %s1885_s15 }
  0x2c   :  { %p1892_p8 = por %p1891_p7, %p1890_p6 }
  0x2e   :  { %p1893_p9 = pnand %p1892_p8, %p1886_p5 }
  0x30   :  { %1896 = shalt.err (!%p1893_p9)
}
  0x31   :  { %s1906_s1 = smov 448   ;;  %s1907_s27 = smov 28  }
  0x32   :  { %55 = dma.hbm_to_vmem [thread:$0]  %s2055_s5, 14336, %s50_s28, [#allocation5], %s1906_s1, %s1906_s1, %s1907_s27  }
  0x33   :  { %1897 = dma.done.wait [#allocation3], 2048  }
  0x34   :  { %1898 = vsyncadd [#allocation3], 4294965248 }
  0x35   :  { %1899 = dma.done.wait [#allocation5], 18432  }
  0x36   :  { %1900 = vsyncadd [#allocation5], 4294948864  ;;  %v1908_v0 = vmov 0   ;;  %v1585_v1 = vld [vmem:[#allocation2 + $0x4] ss:$8 sps:$4 sm:$0xff]  }
  0x37   :  { %211 = vmatprep.mubr.bf16.mxu0 %v1908_v0  ;;  %v1587_v2 = vld [vmem:[#allocation2] ss:$8 sps:$4 sm:$0xff]   ;;  %179 = vmatprep.subr.bf16.mxu0 %v1585_v1  ;;  %v1588_v3 = vld [vmem:[#allocation2 + $0x14] ss:$8 sps:$4 sm:$0xff]   ;;  %v1590_v4 = vld [vmem:[#allocation2 + $0x10] ss:$8 sps:$4 sm:$0xff]  }
  0x38   :  { %180 = vmatpush1.bf16.msra.mxu0 %v1587_v2  ;;  %v1591_v5 = vld [vmem:[#allocation2 + $0x24] ss:$8 sps:$4 sm:$0xff]   ;;  %v1593_v6 = vld [vmem:[#allocation2 + $0x20] ss:$8 sps:$4 sm:$0xff]   ;;  %v1594_v7 = vld [vmem:[#allocation2 + $0x34] ss:$8 sps:$4 sm:$0xff]  }
  0x39   :  { %181 = vmatprep.subr.bf16.mxu0 %v1588_v3  ;;  %v1596_v8 = vld [vmem:[#allocation2 + $0x30] ss:$8 sps:$4 sm:$0xff]   ;;  %v1597_v9 = vld [vmem:[#allocation2 + $0x44] ss:$8 sps:$4 sm:$0xff]   ;;  %v1611_v11 = vld [vmem:[#allocation4] ss:$8 sps:$4 sm:$0xff]  }
  0x3a   :  { %v1609_v10 = vld [vmem:[#allocation4 + $0x4] ss:$8 sps:$4 sm:$0xff]   ;;  %v1612_v12 = vld [vmem:[#allocation4 + $0x14] ss:$8 sps:$4 sm:$0xff]   ;;  %v1599_v13 = vld [vmem:[#allocation2 + $0x40] ss:$8 sps:$4 sm:$0xff]  }
  0x3b   :  { %427 = vmatprep.subr.bf16.mxu1 %v1609_v10  ;;  %v1614_v14 = vld [vmem:[#allocation4 + $0x10] ss:$8 sps:$4 sm:$0xff]   ;;  %v1615_v15 = vld [vmem:[#allocation4 + $0x24] ss:$8 sps:$4 sm:$0xff]   ;;  %v1600_v16 = vld [vmem:[#allocation2 + $0x54] ss:$8 sps:$4 sm:$0xff]  }
  0x3c   :  { %182 = vmatpush1.bf16.msra.mxu0 %v1590_v4  ;;  %428 = vmatpush1.bf16.msra.mxu1 %v1611_v11  ;;  %v1602_v17 = vld [vmem:[#allocation2 + $0x50] ss:$8 sps:$4 sm:$0xff]   ;;  %v1617_v18 = vld [vmem:[#allocation4 + $0x20] ss:$8 sps:$4 sm:$0xff]   ;;  %v1618_v19 = vld [vmem:[#allocation4 + $0x34] ss:$8 sps:$4 sm:$0xff]  }
  0x3d   :  { %183 = vmatprep.subr.bf16.mxu0 %v1591_v5  ;;  %429 = vmatprep.subr.bf16.mxu1 %v1612_v12  ;;  %v1603_v20 = vld [vmem:[#allocation2 + $0x64] ss:$8 sps:$4 sm:$0xff]   ;;  %v1605_v21 = vld [vmem:[#allocation2 + $0x60] ss:$8 sps:$4 sm:$0xff]   ;;  %v1620_v22 = vld [vmem:[#allocation4 + $0x30] ss:$8 sps:$4 sm:$0xff]  }
  0x3e   :  { %v1621_v23 = vld [vmem:[#allocation4 + $0x44] ss:$8 sps:$4 sm:$0xff]   ;;  %v1606_v24 = vld [vmem:[#allocation2 + $0x74] ss:$8 sps:$4 sm:$0xff]   ;;  %v1608_v25 = vld [vmem:[#allocation2 + $0x70] ss:$8 sps:$4 sm:$0xff]  }
  0x3f   :  { %v1623_v26 = vld [vmem:[#allocation4 + $0x40] ss:$8 sps:$4 sm:$0xff]   ;;  %v1624_v27 = vld [vmem:[#allocation4 + $0x54] ss:$8 sps:$4 sm:$0xff]   ;;  %v71_v28 = vld [vmem:[%s2050_s0] sm:$0xf] }
  0x40   :  { %184 = vmatpush1.bf16.msra.mxu0 %v1593_v6  ;;  %430 = vmatpush1.bf16.msra.mxu1 %v1614_v14  ;;  %v1626_v29 = vld [vmem:[#allocation4 + $0x50] ss:$8 sps:$4 sm:$0xff]   ;;  %v1627_v30 = vld [vmem:[#allocation4 + $0x64] ss:$8 sps:$4 sm:$0xff]   ;;  %v1629_v31 = vld [vmem:[#allocation4 + $0x60] ss:$8 sps:$4 sm:$0xff]  }
  0x41   :  { %185 = vmatprep.subr.bf16.mxu0 %v1594_v7  ;;  %431 = vmatprep.subr.bf16.mxu1 %v1615_v15  ;;  %v1630_v32 = vld [vmem:[#allocation4 + $0x74] ss:$8 sps:$4 sm:$0xff]   ;;  %v1632_v33 = vld [vmem:[#allocation4 + $0x70] ss:$8 sps:$4 sm:$0xff]   ;;  %v1633_v34 = vld [vmem:[#allocation4 + $0x84] ss:$8 sps:$4 sm:$0xff]   ;;  %v89_v15 = vlaneseq }
  0x42   :  { %v1635_v35 = vld [vmem:[#allocation4 + $0x80] ss:$8 sps:$4 sm:$0xff]   ;;  %v1636_v36 = vld [vmem:[#allocation4 + $0x94] ss:$8 sps:$4 sm:$0xff]   ;;  %v1638_v37 = vld [vmem:[#allocation4 + $0x90] ss:$8 sps:$4 sm:$0xff]  }
  0x43   :  { %v1639_v38 = vld [vmem:[#allocation4 + $0xa4] ss:$8 sps:$4 sm:$0xff]   ;;  %v1641_v39 = vld [vmem:[#allocation4 + $0xa0] ss:$8 sps:$4 sm:$0xff]   ;;  %v1642_v40 = vld [vmem:[#allocation4 + $0xb4] ss:$8 sps:$4 sm:$0xff]  }
  0x44   :  { %186 = vmatpush1.bf16.msra.mxu0 %v1596_v8  ;;  %432 = vmatpush1.bf16.msra.mxu1 %v1617_v18  ;;  %v1644_v41 = vld [vmem:[#allocation4 + $0xb0] ss:$8 sps:$4 sm:$0xff]   ;;  %v1645_v42 = vld [vmem:[#allocation4 + $0xc4] ss:$8 sps:$4 sm:$0xff]   ;;  %v1647_v43 = vld [vmem:[#allocation4 + $0xc0] ss:$8 sps:$4 sm:$0xff]  }
  0x45   :  { %187 = vmatprep.subr.bf16.mxu0 %v1597_v9  ;;  %433 = vmatprep.subr.bf16.mxu1 %v1618_v19  ;;  %v1648_v44 = vld [vmem:[#allocation4 + $0xd4] ss:$8 sps:$4 sm:$0xff]   ;;  %v1650_v45 = vld [vmem:[#allocation4 + $0xd0] ss:$8 sps:$4 sm:$0xff]   ;;  %v1651_v46 = vld [vmem:[#allocation4 + $0xe4] ss:$8 sps:$4 sm:$0xff]  }
  0x46   :  { %v1653_v47 = vld [vmem:[#allocation4 + $0xe0] ss:$8 sps:$4 sm:$0xff]   ;;  %v1654_v48 = vld [vmem:[#allocation4 + $0xf4] ss:$8 sps:$4 sm:$0xff]   ;;  %v1656_v49 = vld [vmem:[#allocation4 + $0xf0] ss:$8 sps:$4 sm:$0xff]  }
  0x47   :  { %v1657_v50 = vld [vmem:[#allocation6] ss:$28 sps:$4 sm:$0xff]   ;;  %v1662_v52 = vld [vmem:[#allocation6 + $0xc] ss:$28 sps:$4 sm:$0xff]   ;;  %v1663_v54 = vld [vmem:[#allocation6 + $0x38] ss:$28 sps:$4 sm:$0xff]  }
  0x48   :  { %188 = vmatpush1.bf16.msra.mxu0 %v1599_v13  ;;  %434 = vmatpush1.bf16.msra.mxu1 %v1620_v22  ;;  %v1659_v51 = vld [vmem:[#allocation6 + $0x4] ss:$28 sps:$4 sm:$0xff]   ;;  %v1665_v53 = vld [vmem:[#allocation6 + $0x3c] ss:$28 sps:$4 sm:$0xff]   ;;  %v1671_v55 = vld [vmem:[#allocation6 + $0x74] ss:$28 sps:$4 sm:$0xff]  }
  0x49   :  { %189 = vmatprep.subr.bf16.mxu0 %v1600_v16  ;;  %435 = vmatprep.subr.bf16.mxu1 %v1621_v23  ;;  %v1669_v56 = vld [vmem:[#allocation6 + $0x70] ss:$28 sps:$4 sm:$0xff]   ;;  %v1675_v58 = vld [vmem:[#allocation6 + $0xa8] ss:$28 sps:$4 sm:$0xff]   ;;  %v1681_v60 = vld [vmem:[#allocation6 + $0xe0] ss:$28 sps:$4 sm:$0xff]  }
  0x4a   :  { %v1677_v57 = vld [vmem:[#allocation6 + $0xac] ss:$28 sps:$4 sm:$0xff]   ;;  %v1683_v59 = vld [vmem:[#allocation6 + $0xe4] ss:$28 sps:$4 sm:$0xff]   ;;  %v1689_v61 = vld [vmem:[#allocation6 + $0x11c] ss:$28 sps:$4 sm:$0xff]  }
  0x4b   :  { %v1687_v62 = vld [vmem:[#allocation6 + $0x118] ss:$28 sps:$4 sm:$0xff]   ;;  %v1693_v0 = vld [vmem:[#allocation6 + $0x150] ss:$28 sps:$4 sm:$0xff]   ;;  %v1699_v2 = vld [vmem:[#allocation6 + $0x188] ss:$28 sps:$4 sm:$0xff]  }
  0x4c   :  { %190 = vmatpush1.bf16.msra.mxu0 %v1602_v17  ;;  %436 = vmatpush1.bf16.msra.mxu1 %v1623_v26  ;;  %v1695_v63 = vld [vmem:[#allocation6 + $0x154] ss:$28 sps:$4 sm:$0xff]   ;;  %v1701_v1 = vld [vmem:[#allocation6 + $0x18c] ss:$28 sps:$4 sm:$0xff]   ;;  %v1707_v3 = vld [vmem:[#allocation6 + $0x1c4] ss:$28 sps:$4 sm:$0xff]  }
  0x4d   :  { %191 = vmatprep.subr.bf16.mxu0 %v1603_v20  ;;  %437 = vmatprep.subr.bf16.mxu1 %v1624_v27  ;;  %v1705_v4 = vld [vmem:[#allocation6 + $0x1c0] ss:$28 sps:$4 sm:$0xff]   ;;  %v1711_v6 = vld [vmem:[#allocation6 + $0x1f8] ss:$28 sps:$4 sm:$0xff]   ;;  %v1717_v8 = vld [vmem:[#allocation6 + $0x230] ss:$28 sps:$4 sm:$0xff]  }
  0x4e   :  { %v1713_v5 = vld [vmem:[#allocation6 + $0x1fc] ss:$28 sps:$4 sm:$0xff]   ;;  %v1719_v7 = vld [vmem:[#allocation6 + $0x234] ss:$28 sps:$4 sm:$0xff]   ;;  %v1725_v9 = vld [vmem:[#allocation6 + $0x26c] ss:$28 sps:$4 sm:$0xff]  }
  0x4f   :  { %v1723_v10 = vld [vmem:[#allocation6 + $0x268] ss:$28 sps:$4 sm:$0xff]   ;;  %v1729_v12 = vld [vmem:[#allocation6 + $0x2a0] ss:$28 sps:$4 sm:$0xff]   ;;  %v1735_v14 = vld [vmem:[#allocation6 + $0x2d8] ss:$28 sps:$4 sm:$0xff]  }
  0x50   :  { %192 = vmatpush1.bf16.msra.mxu0 %v1605_v21  ;;  %438 = vmatpush1.bf16.msra.mxu1 %v1626_v29  ;;  %v1731_v11 = vld [vmem:[#allocation6 + $0x2a4] ss:$28 sps:$4 sm:$0xff]   ;;  %v1737_v13 = vld [vmem:[#allocation6 + $0x2dc] ss:$28 sps:$4 sm:$0xff]   ;;  %v1995_v16 = vshrl.u32 %v89_v15, 7 }
  0x51   :  { %193 = vmatprep.subr.bf16.mxu0 %v1606_v24  ;;  %439 = vmatprep.subr.bf16.mxu1 %v1627_v30  ;;  %v68_v18 = vld [vmem:[%s2052_s2] sm:$0x3] }
  0x52   :  { %v1998_v17 = vsub.s32 0, %v1995_v16  ;;  %v2004_v19 = vsub.s32 1, %v1995_v16 }
  0x54   :  { %194 = vmatpush1.bf16.msra.mxu0 %v1608_v25  ;;  %440 = vmatpush1.bf16.msra.mxu1 %v1629_v31  ;;  %v92_v20 = vrot.slane %v68_v18, %v1998_v17  ;;  %v96_v21 = vrot.slane %v68_v18, %v2004_v19  ;;  %v1660_v31 = vld [vmem:[#allocation6 + $0x8] ss:$28 sps:$4 sm:$0xff]  }
  0x55   :  { %441 = vmatprep.subr.bf16.mxu1 %v1630_v32  ;;  %1212 = vmatprep.subr.bf16.mxu0 %v1659_v51  ;;  %v1722_v51 = vld [vmem:[#allocation6 + $0x23c] ss:$28 sps:$4 sm:$0xff]  }
  0x57   :  { %212 = vmatmul.mubr.bf16.vlgmr.msra.gmra.mrb[0].mxu0 %v71_v28 }
  0x58   :  { %442 = vmatpush1.bf16.msra.mxu1 %v1632_v33  ;;  %1213 = vmatpush1.bf16.msra.mxu0 %v1657_v50  ;;  %v1668_v33 = vld [vmem:[#allocation6 + $0x44] ss:$28 sps:$4 sm:$0xff]  }
  0x59   :  { %443 = vmatprep.subr.bf16.mxu1 %v1633_v34  ;;  %1214 = vmatprep.subr.bf16.mxu0 %v1665_v53  ;;  %v1666_v34 = vld [vmem:[#allocation6 + $0x40] ss:$28 sps:$4 sm:$0xff]   ;;  %v1728_v53 = vld [vmem:[#allocation6 + $0x274] ss:$28 sps:$4 sm:$0xff]  }
  0x5a   :  { %v1714_v50 = vld [vmem:[#allocation6 + $0x200] ss:$28 sps:$4 sm:$0xff]  }
  0x5c   :  { %444 = vmatpush1.bf16.msra.mxu1 %v1635_v35  ;;  %1215 = vmatpush1.bf16.msra.mxu0 %v1663_v54  ;;  %v1674_v35 = vld [vmem:[#allocation6 + $0x7c] ss:$28 sps:$4 sm:$0xff]   ;;  %v1726_v54 = vld [vmem:[#allocation6 + $0x270] ss:$28 sps:$4 sm:$0xff]  }
  0x5d   :  { %445 = vmatprep.subr.bf16.mxu1 %v1636_v36  ;;  %1216 = vmatprep.subr.bf16.mxu0 %v1671_v55  ;;  %v1672_v36 = vld [vmem:[#allocation6 + $0x78] ss:$28 sps:$4 sm:$0xff]   ;;  %v1734_v55 = vld [vmem:[#allocation6 + $0x2ac] ss:$28 sps:$4 sm:$0xff]  }
  0x60   :  { %446 = vmatpush1.bf16.msra.mxu1 %v1638_v37  ;;  %1217 = vmatpush1.bf16.msra.mxu0 %v1669_v56  ;;  %v1680_v37 = vld [vmem:[#allocation6 + $0xb4] ss:$28 sps:$4 sm:$0xff]   ;;  %v1732_v56 = vld [vmem:[#allocation6 + $0x2a8] ss:$28 sps:$4 sm:$0xff]  }
  0x61   :  { %447 = vmatprep.subr.bf16.mxu1 %v1639_v38  ;;  %1218 = vmatprep.subr.bf16.mxu0 %v1677_v57  ;;  %v1678_v38 = vld [vmem:[#allocation6 + $0xb0] ss:$28 sps:$4 sm:$0xff]   ;;  %v1740_v57 = vld [vmem:[#allocation6 + $0x2e4] ss:$28 sps:$4 sm:$0xff]  }
  0x64   :  { %448 = vmatpush1.bf16.msra.mxu1 %v1641_v39  ;;  %1219 = vmatpush1.bf16.msra.mxu0 %v1675_v58  ;;  %v1686_v39 = vld [vmem:[#allocation6 + $0xec] ss:$28 sps:$4 sm:$0xff]   ;;  %v1738_v58 = vld [vmem:[#allocation6 + $0x2e0] ss:$28 sps:$4 sm:$0xff]  }
  0x65   :  { %449 = vmatprep.subr.bf16.mxu1 %v1642_v40  ;;  %1220 = vmatprep.subr.bf16.mxu0 %v1683_v59  ;;  %v1684_v40 = vld [vmem:[#allocation6 + $0xe8] ss:$28 sps:$4 sm:$0xff]   ;;  %v1743_v59 = vld [vmem:[#allocation6 + $0x314] ss:$28 sps:$4 sm:$0xff]  }
  0x68   :  { %450 = vmatpush1.bf16.msra.mxu1 %v1644_v41  ;;  %1221 = vmatpush1.bf16.msra.mxu0 %v1681_v60  ;;  %v1692_v41 = vld [vmem:[#allocation6 + $0x124] ss:$28 sps:$4 sm:$0xff]   ;;  %v1746_v60 = vld [vmem:[#allocation6 + $0x31c] ss:$28 sps:$4 sm:$0xff]  }
  0x69   :  { %451 = vmatprep.subr.bf16.mxu1 %v1645_v42  ;;  %1222 = vmatprep.subr.bf16.mxu0 %v1689_v61  ;;  %v1690_v42 = vld [vmem:[#allocation6 + $0x120] ss:$28 sps:$4 sm:$0xff]   ;;  %v1741_v61 = vld [vmem:[#allocation6 + $0x310] ss:$28 sps:$4 sm:$0xff]  }
  0x6c   :  { %452 = vmatpush1.bf16.msra.mxu1 %v1647_v43  ;;  %1223 = vmatpush1.bf16.msra.mxu0 %v1687_v62  ;;  %v1698_v43 = vld [vmem:[#allocation6 + $0x15c] ss:$28 sps:$4 sm:$0xff]  }
  0x6d   :  { %453 = vmatprep.subr.bf16.mxu1 %v1648_v44  ;;  %1224 = vmatprep.subr.bf16.mxu0 %v1695_v63  ;;  %v1696_v44 = vld [vmem:[#allocation6 + $0x158] ss:$28 sps:$4 sm:$0xff]   ;;  %v1749_v63 = vld [vmem:[#allocation6 + $0x34c] ss:$28 sps:$4 sm:$0xff]  }
  0x6e   :  { %v1744_v62 = vld [vmem:[#allocation6 + $0x318] ss:$28 sps:$4 sm:$0xff]  }
  0x70   :  { %454 = vmatpush1.bf16.msra.mxu1 %v1650_v45  ;;  %1225 = vmatpush1.bf16.msra.mxu0 %v1693_v0  ;;  %v1704_v45 = vld [vmem:[#allocation6 + $0x194] ss:$28 sps:$4 sm:$0xff]  }
  0x71   :  { %455 = vmatprep.subr.bf16.mxu1 %v1651_v46  ;;  %1226 = vmatprep.subr.bf16.mxu0 %v1701_v1  ;;  %v1702_v46 = vld [vmem:[#allocation6 + $0x190] ss:$28 sps:$4 sm:$0xff]   ;;  %v1747_v1 = vld [vmem:[#allocation6 + $0x348] ss:$28 sps:$4 sm:$0xff]  }
  0x72   :  { %v1752_v0 = vld [vmem:[#allocation6 + $0x354] ss:$28 sps:$4 sm:$0xff]  }
  0x74   :  { %456 = vmatpush1.bf16.msra.mxu1 %v1653_v47  ;;  %1227 = vmatpush1.bf16.msra.mxu0 %v1699_v2  ;;  %v1710_v47 = vld [vmem:[#allocation6 + $0x1cc] ss:$28 sps:$4 sm:$0xff]  }
  0x75   :  { %457 = vmatprep.subr.bf16.mxu1 %v1654_v48  ;;  %1228 = vmatprep.subr.bf16.mxu0 %v1707_v3  ;;  %v1708_v48 = vld [vmem:[#allocation6 + $0x1c8] ss:$28 sps:$4 sm:$0xff]   ;;  %v1750_v2 = vld [vmem:[#allocation6 + $0x350] ss:$28 sps:$4 sm:$0xff]  }
  0x76   :  { %v1755_v3 = vld [vmem:[#allocation6 + $0x14] ss:$28 sps:$4 sm:$0xff]  }
  0x78   :  { %458 = vmatpush1.bf16.msra.mxu1 %v1656_v49  ;;  %1229 = vmatpush1.bf16.msra.mxu0 %v1705_v4  ;;  %v1716_v49 = vld [vmem:[#allocation6 + $0x204] ss:$28 sps:$4 sm:$0xff]   ;;  %v1756_v4 = vld [vmem:[#allocation6 + $0x1d8] ss:$28 sps:$4 sm:$0xff]  }
  0x79   :  { %1253 = vmatprep.subr.bf16.mxu1 %v1662_v52  ;;  %1230 = vmatprep.subr.bf16.mxu0 %v1713_v5  ;;  %v1720_v52 = vld [vmem:[#allocation6 + $0x238] ss:$28 sps:$4 sm:$0xff]  }
  0x7a   :  { %v69_v5 = vld [vmem:[%s2054_s4] sm:$0x3] }
  0x7c   :  { %1231 = vmatpush1.bf16.msra.mxu0 %v1711_v6  ;;  %v260_v6 = vrot.slane %v69_v5, %v1998_v17 }
  0x7d   :  { %1232 = vmatprep.subr.bf16.mxu0 %v1719_v7  ;;  %v264_v7 = vrot.slane %v69_v5, %v2004_v19  ;;  %v615_v5 = vsub.s32 3, %v1995_v16 }
  0x80   :  { %1233 = vmatpush1.bf16.msra.mxu0 %v1717_v8 }
  0x81   :  { %1234 = vmatprep.subr.bf16.mxu0 %v1725_v9 }
  0x84   :  { %1235 = vmatpush1.bf16.msra.mxu0 %v1723_v10 }
  0x85   :  { %1236 = vmatprep.subr.bf16.mxu0 %v1731_v11 }
  0x88   :  { %1237 = vmatpush1.bf16.msra.mxu0 %v1729_v12 }
  0x89   :  { %1238 = vmatprep.subr.bf16.mxu0 %v1737_v13 }
  0x8c   :  { %1239 = vmatpush1.bf16.msra.mxu0 %v1735_v14 }
  0x8d   :  { %1240 = vmatprep.subr.bf16.mxu0 %v1743_v59  ;;  %v1807_v59 = vld [vmem:[#allocation6 + $0x2b4] ss:$28 sps:$4 sm:$0xff]  }
  0x90   :  { %1241 = vmatpush1.bf16.msra.mxu0 %v1741_v61  ;;  %v1810_v61 = vld [vmem:[#allocation6 + $0x2ec] ss:$28 sps:$4 sm:$0xff]  }
  0x91   :  { %1242 = vmatprep.subr.bf16.mxu0 %v1749_v63  ;;  %v1813_v63 = vld [vmem:[#allocation6 + $0x324] ss:$28 sps:$4 sm:$0xff]  }
  0x94   :  { %1243 = vmatpush1.bf16.msra.mxu0 %v1747_v1  ;;  %v1816_v1 = vld [vmem:[#allocation6 + $0x35c] ss:$28 sps:$4 sm:$0xff]  }
  0x95   :  { %1294 = vmatprep.subr.bf16.mxu0 %v1755_v3  ;;  %v611_v3 = vsub.s32 2, %v1995_v16 }
 0x12a   :  { %v213_v22 = vpop.f32.mrb[0].mxu0 }
 0x12b   :  { %v214_v23 = vadd.f32 %v213_v22, %v92_v20  ;;  %v215_v24 = vpop.f32.mrb[1].mxu0  ;;  %v1753_v20 = vld [vmem:[#allocation6 + $0x10] ss:$28 sps:$4 sm:$0xff]  }
 0x12c   :  { %v216_v25 = vadd.f32 %v215_v24, %v96_v21  ;;  %v217_v26 = vpop.f32.mrb[2].mxu0  ;;  %v1757_v21 = vld [vmem:[#allocation6 + $0x18] ss:$28 sps:$4 sm:$0xff]   ;;  %v1761_v24 = vld [vmem:[#allocation6 + $0x210] ss:$28 sps:$4 sm:$0xff]  }
 0x12d   :  { %v220_v27 = vmax.f32 %v214_v23, 0.0  ;;  %v218_v28 = vpop.f32.mrb[3].mxu0  ;;  %v1760_v23 = vld [vmem:[#allocation6 + $0x4c] ss:$28 sps:$4 sm:$0xff]  }
 0x12e   :  { %v221_v29 = vmax.f32 %v216_v25, 0.0  ;;  %v1758_v25 = vld [vmem:[#allocation6 + $0x48] ss:$28 sps:$4 sm:$0xff]   ;;  %v1762_v26 = vld [vmem:[#allocation6 + $0x50] ss:$28 sps:$4 sm:$0xff]  }
 0x12f   :  { %v222_v32 = vpack.c.bf16 %v220_v27, %v220_v27  ;;  %v1765_v27 = vld [vmem:[#allocation6 + $0x84] ss:$28 sps:$4 sm:$0xff]  }
 0x130   :  { %v223_v30 = vpack.c.bf16 %v221_v29, %v221_v29  ;;  %v1766_v28 = vld [vmem:[#allocation6 + $0x248] ss:$28 sps:$4 sm:$0xff]   ;;  %v1763_v29 = vld [vmem:[#allocation6 + $0x80] ss:$28 sps:$4 sm:$0xff]  }
 0x132   :  { %459 = vmatprep.mubr.bf16.mxu1 %v223_v30  ;;  %v1767_v30 = vld [vmem:[#allocation6 + $0x88] ss:$28 sps:$4 sm:$0xff]  }
 0x133   :  { %460 = vmatmul.mubr.bf16.vlgmr.msra.gmra.mrb[0].mxu1 %v222_v32  ;;  %v1771_v32 = vld [vmem:[#allocation6 + $0x280] ss:$28 sps:$4 sm:$0xff]  }
 0x134   :  { %1254 = vmatpush1.bf16.msra.mxu1 %v1660_v31  ;;  %v1770_v31 = vld [vmem:[#allocation6 + $0xbc] ss:$28 sps:$4 sm:$0xff]  }
 0x135   :  { %1255 = vmatprep.subr.bf16.mxu1 %v1668_v33  ;;  %v1768_v33 = vld [vmem:[#allocation6 + $0xb8] ss:$28 sps:$4 sm:$0xff]  }
 0x138   :  { %1256 = vmatpush1.bf16.msra.mxu1 %v1666_v34  ;;  %v1772_v34 = vld [vmem:[#allocation6 + $0xc0] ss:$28 sps:$4 sm:$0xff]  }
 0x139   :  { %1257 = vmatprep.subr.bf16.mxu1 %v1674_v35  ;;  %v1775_v35 = vld [vmem:[#allocation6 + $0xf4] ss:$28 sps:$4 sm:$0xff]  }
 0x13c   :  { %1258 = vmatpush1.bf16.msra.mxu1 %v1672_v36  ;;  %v1776_v36 = vld [vmem:[#allocation6 + $0x2b8] ss:$28 sps:$4 sm:$0xff]  }
 0x13d   :  { %1259 = vmatprep.subr.bf16.mxu1 %v1680_v37  ;;  %v1773_v37 = vld [vmem:[#allocation6 + $0xf0] ss:$28 sps:$4 sm:$0xff]  }
 0x140   :  { %1260 = vmatpush1.bf16.msra.mxu1 %v1678_v38  ;;  %v1777_v38 = vld [vmem:[#allocation6 + $0xf8] ss:$28 sps:$4 sm:$0xff]  }
 0x141   :  { %1261 = vmatprep.subr.bf16.mxu1 %v1686_v39  ;;  %v1780_v39 = vld [vmem:[#allocation6 + $0x12c] ss:$28 sps:$4 sm:$0xff]  }
 0x144   :  { %1262 = vmatpush1.bf16.msra.mxu1 %v1684_v40  ;;  %v1781_v40 = vld [vmem:[#allocation6 + $0x2f0] ss:$28 sps:$4 sm:$0xff]  }
 0x145   :  { %1263 = vmatprep.subr.bf16.mxu1 %v1692_v41  ;;  %v1778_v41 = vld [vmem:[#allocation6 + $0x128] ss:$28 sps:$4 sm:$0xff]  }
 0x148   :  { %1264 = vmatpush1.bf16.msra.mxu1 %v1690_v42  ;;  %v1782_v42 = vld [vmem:[#allocation6 + $0x130] ss:$28 sps:$4 sm:$0xff]  }
 0x149   :  { %1265 = vmatprep.subr.bf16.mxu1 %v1698_v43  ;;  %v1785_v43 = vld [vmem:[#allocation6 + $0x164] ss:$28 sps:$4 sm:$0xff]  }
 0x14c   :  { %1266 = vmatpush1.bf16.msra.mxu1 %v1696_v44  ;;  %v1786_v44 = vld [vmem:[#allocation6 + $0x328] ss:$28 sps:$4 sm:$0xff]  }
 0x14d   :  { %1267 = vmatprep.subr.bf16.mxu1 %v1704_v45  ;;  %v1783_v45 = vld [vmem:[#allocation6 + $0x160] ss:$28 sps:$4 sm:$0xff]  }
 0x150   :  { %1268 = vmatpush1.bf16.msra.mxu1 %v1702_v46  ;;  %v1787_v46 = vld [vmem:[#allocation6 + $0x168] ss:$28 sps:$4 sm:$0xff]  }
 0x151   :  { %1269 = vmatprep.subr.bf16.mxu1 %v1710_v47  ;;  %v1790_v47 = vld [vmem:[#allocation6 + $0x19c] ss:$28 sps:$4 sm:$0xff]  }
 0x154   :  { %1270 = vmatpush1.bf16.msra.mxu1 %v1708_v48  ;;  %v1791_v48 = vld [vmem:[#allocation6 + $0x360] ss:$28 sps:$4 sm:$0xff]  }
 0x155   :  { %1271 = vmatprep.subr.bf16.mxu1 %v1716_v49  ;;  %v1788_v49 = vld [vmem:[#allocation6 + $0x198] ss:$28 sps:$4 sm:$0xff]  }
 0x158   :  { %1272 = vmatpush1.bf16.msra.mxu1 %v1714_v50  ;;  %v1792_v50 = vld [vmem:[#allocation6 + $0x1a0] ss:$28 sps:$4 sm:$0xff]  }
 0x159   :  { %1273 = vmatprep.subr.bf16.mxu1 %v1722_v51  ;;  %v1795_v51 = vld [vmem:[#allocation6 + $0x1d4] ss:$28 sps:$4 sm:$0xff]  }
 0x15c   :  { %1274 = vmatpush1.bf16.msra.mxu1 %v1720_v52  ;;  %v1793_v52 = vld [vmem:[#allocation6 + $0x1d0] ss:$28 sps:$4 sm:$0xff]  }
 0x15d   :  { %1275 = vmatprep.subr.bf16.mxu1 %v1728_v53  ;;  %v1798_v53 = vld [vmem:[#allocation6 + $0x20c] ss:$28 sps:$4 sm:$0xff]  }
 0x160   :  { %1276 = vmatpush1.bf16.msra.mxu1 %v1726_v54  ;;  %v1796_v54 = vld [vmem:[#allocation6 + $0x208] ss:$28 sps:$4 sm:$0xff]  }
 0x161   :  { %1277 = vmatprep.subr.bf16.mxu1 %v1734_v55  ;;  %v1801_v55 = vld [vmem:[#allocation6 + $0x244] ss:$28 sps:$4 sm:$0xff]  }
 0x164   :  { %1278 = vmatpush1.bf16.msra.mxu1 %v1732_v56  ;;  %v1799_v56 = vld [vmem:[#allocation6 + $0x240] ss:$28 sps:$4 sm:$0xff]  }
 0x165   :  { %1279 = vmatprep.subr.bf16.mxu1 %v1740_v57  ;;  %v1804_v57 = vld [vmem:[#allocation6 + $0x27c] ss:$28 sps:$4 sm:$0xff]  }
 0x168   :  { %1280 = vmatpush1.bf16.msra.mxu1 %v1738_v58  ;;  %v1802_v58 = vld [vmem:[#allocation6 + $0x278] ss:$28 sps:$4 sm:$0xff]  }
 0x169   :  { %1281 = vmatprep.subr.bf16.mxu1 %v1746_v60  ;;  %v1805_v60 = vld [vmem:[#allocation6 + $0x2b0] ss:$28 sps:$4 sm:$0xff]  }
 0x16c   :  { %1282 = vmatpush1.bf16.msra.mxu1 %v1744_v62  ;;  %v1808_v62 = vld [vmem:[#allocation6 + $0x2e8] ss:$28 sps:$4 sm:$0xff]  }
 0x16d   :  { %1283 = vmatprep.subr.bf16.mxu1 %v1752_v0  ;;  %v1811_v0 = vld [vmem:[#allocation6 + $0x320] ss:$28 sps:$4 sm:$0xff]  }
 0x170   :  { %1284 = vmatpush1.bf16.msra.mxu1 %v1750_v2  ;;  %v1814_v2 = vld [vmem:[#allocation6 + $0x358] ss:$28 sps:$4 sm:$0xff]  }
 0x171   :  { %1555 = vmatprep.subr.bf16.mxu1 %v1756_v4  ;;  %v70_v4 = vld [vmem:[%s2056_s6] sm:$0xff] }
 0x206   :  { %v461_v8 = vpop.f32.mrb[0].mxu1 }
 0x207   :  { %v462_v9 = vadd.f32 %v461_v8, %v260_v6  ;;  %v463_v10 = vpop.f32.mrb[1].mxu1  ;;  %v604_v6 = vrot.slane %v70_v4, %v1998_v17  ;;  %v608_v8 = vrot.slane %v70_v4, %v2004_v19 }
 0x208   :  { %v464_v11 = vadd.f32 %v463_v10, %v264_v7  ;;  %v465_v12 = vpop.f32.mrb[2].mxu1  ;;  %v612_v7 = vrot.slane %v70_v4, %v611_v3 }
 0x209   :  { %v468_v13 = vmax.f32 %v462_v9, 0.0  ;;  %v466_v14 = vpop.f32.mrb[3].mxu1  ;;  %v616_v9 = vrot.slane %v70_v4, %v615_v5 }
 0x20a   :  { %v469_v15 = vmax.f32 %v464_v11, 0.0 }
 0x20b   :  { %v2013_v22 = vpack.c.bf16 %v468_v13, %v468_v13 }
 0x20c   :  { %v471_v18 = vpack.c.bf16 %v469_v15, %v469_v15 }
 0x20e   :  { %1244 = vmatprep.mubr.bf16.mxu0 %v471_v18  ;;  %1285 = vmatprep.mubr.bf16.mxu1 %v471_v18 }
 0x20f   :  { %1245 = vmatmul.mubr.bf16.vlgmr.msra.gmra.mrb[4].mxu0 %v2013_v22  ;;  %1286 = vmatmul.mubr.bf16.vlgmr.msra.gmra.mrb[4].mxu1 %v2013_v22 }
 0x210   :  { %1295 = vmatpush1.bf16.msra.mxu0 %v1753_v20  ;;  %1556 = vmatpush3.bf16.msra.mxu1 %v1757_v21 }
 0x211   :  { %1326 = vmatprep.mubr.bf16.mxu0 %v471_v18  ;;  %1367 = vmatprep.mubr.bf16.mxu1 %v471_v18 }
 0x212   :  { %1296 = vmatprep.subr.bf16.mxu0 %v1760_v23  ;;  %1557 = vmatprep.subr.bf16.mxu1 %v1761_v24 }
 0x214   :  { %1297 = vmatpush1.bf16.msra.mxu0 %v1758_v25  ;;  %1558 = vmatpush3.bf16.msra.mxu1 %v1762_v26 }
 0x215   :  { %1298 = vmatprep.subr.bf16.mxu0 %v1765_v27  ;;  %1559 = vmatprep.subr.bf16.mxu1 %v1766_v28  ;;  %v627_v27 = vsub.s32 6, %v1995_v16 }
 0x218   :  { %1299 = vmatpush1.bf16.msra.mxu0 %v1763_v29  ;;  %1560 = vmatpush3.bf16.msra.mxu1 %v1767_v30  ;;  %v628_v29 = vrot.slane %v70_v4, %v627_v27 }
 0x219   :  { %1300 = vmatprep.subr.bf16.mxu0 %v1770_v31  ;;  %1561 = vmatprep.subr.bf16.mxu1 %v1771_v32 }
 0x21c   :  { %1301 = vmatpush1.bf16.msra.mxu0 %v1768_v33  ;;  %1562 = vmatpush3.bf16.msra.mxu1 %v1772_v34 }
 0x21d   :  { %1302 = vmatprep.subr.bf16.mxu0 %v1775_v35  ;;  %1563 = vmatprep.subr.bf16.mxu1 %v1776_v36  ;;  %v619_v36 = vsub.s32 4, %v1995_v16 }
 0x220   :  { %1303 = vmatpush1.bf16.msra.mxu0 %v1773_v37  ;;  %1564 = vmatpush3.bf16.msra.mxu1 %v1777_v38  ;;  %v623_v37 = vsub.s32 5, %v1995_v16  ;;  %v620_v38 = vrot.slane %v70_v4, %v619_v36 }
 0x221   :  { %1304 = vmatprep.subr.bf16.mxu0 %v1780_v39  ;;  %1565 = vmatprep.subr.bf16.mxu1 %v1781_v40 }
 0x222   :  { %v624_v39 = vrot.slane %v70_v4, %v623_v37 }
 0x224   :  { %1305 = vmatpush1.bf16.msra.mxu0 %v1778_v41  ;;  %1566 = vmatpush3.bf16.msra.mxu1 %v1782_v42 }
 0x225   :  { %1306 = vmatprep.subr.bf16.mxu0 %v1785_v43  ;;  %1567 = vmatprep.subr.bf16.mxu1 %v1786_v44 }
 0x228   :  { %1307 = vmatpush1.bf16.msra.mxu0 %v1783_v45  ;;  %1568 = vmatpush3.bf16.msra.mxu1 %v1787_v46 }
 0x229   :  { %1308 = vmatprep.subr.bf16.mxu0 %v1790_v47  ;;  %1569 = vmatprep.subr.bf16.mxu1 %v1791_v48 }
 0x22c   :  { %1309 = vmatpush1.bf16.msra.mxu0 %v1788_v49  ;;  %1570 = vmatpush3.bf16.msra.mxu1 %v1792_v50 }
 0x22d   :  { %1310 = vmatprep.subr.bf16.mxu0 %v1795_v51 }
 0x22f   :  { %1368 = vmatmul.mubr.bf16.vlgmr.msra.gmra.mrb[8].mxu1 %v2013_v22 }
 0x230   :  { %1311 = vmatpush1.bf16.msra.mxu0 %v1793_v52 }
 0x231   :  { %1312 = vmatprep.subr.bf16.mxu0 %v1798_v53 }
 0x234   :  { %1313 = vmatpush1.bf16.msra.mxu0 %v1796_v54 }
 0x235   :  { %1314 = vmatprep.subr.bf16.mxu0 %v1801_v55 }
 0x238   :  { %1315 = vmatpush1.bf16.msra.mxu0 %v1799_v56 }
 0x239   :  { %1316 = vmatprep.subr.bf16.mxu0 %v1804_v57 }
 0x23c   :  { %1317 = vmatpush1.bf16.msra.mxu0 %v1802_v58 }
 0x23d   :  { %1318 = vmatprep.subr.bf16.mxu0 %v1807_v59 }
 0x240   :  { %1319 = vmatpush1.bf16.msra.mxu0 %v1805_v60 }
 0x241   :  { %1320 = vmatprep.subr.bf16.mxu0 %v1810_v61 }
 0x244   :  { %1321 = vmatpush1.bf16.msra.mxu0 %v1808_v62 }
 0x245   :  { %1322 = vmatprep.subr.bf16.mxu0 %v1813_v63 }
 0x248   :  { %1323 = vmatpush1.bf16.msra.mxu0 %v1811_v0 }
 0x249   :  { %1324 = vmatprep.subr.bf16.mxu0 %v1816_v1 }
 0x24c   :  { %1325 = vmatpush1.bf16.msra.mxu0 %v1814_v2 }
 0x24f   :  { %1327 = vmatmul.mubr.bf16.vlgmr.msra.gmra.mrb[8].mxu0 %v2013_v22 }
 0x2e2   :  { %v1246_v10 = vpop.f32.mrb[4].mxu0  ;;  %v1287_v11 = vpop.f32.mrb[4].mxu1 }
 0x2e3   :  { %v1247_v12 = vadd.f32 %v1246_v10, %v604_v6  ;;  %v1288_v13 = vadd.f32 %v1287_v11, %v612_v7  ;;  %v1248_v14 = vpop.f32.mrb[5].mxu0  ;;  %v1289_v15 = vpop.f32.mrb[5].mxu1 }
 0x2e4   :  { %v1249_v18 = vadd.f32 %v1248_v14, %v608_v8  ;;  %v1290_v20 = vadd.f32 %v1289_v15, %v616_v9  ;;  %v1250_v21 = vpop.f32.mrb[6].mxu0  ;;  %v1291_v22 = vpop.f32.mrb[6].mxu1 }
 0x2e5   :  { %1817 = vtanh.f32 %v1247_v12  ;;  %v1251_v23 = vpop.f32.mrb[7].mxu0  ;;  %v1292_v24 = vpop.f32.mrb[7].mxu1 }
 0x2e6   :  { %1819 = vtanh.f32 %v1288_v13 }
 0x2e7   :  { %1821 = vtanh.f32 %v1249_v18 }
 0x2e8   :  { %1823 = vtanh.f32 %v1290_v20 }
 0x2ef   :  { %v1818_v17 = vpop.eup %1817 }
 0x2f0   :  { %v1820_v25 = vpop.eup %1819  ;;  %1382 = vst [vmem:[%s2057_s7] sm:$0xff] %v1818_v17 }
 0x2f1   :  { %v1822_v19 = vpop.eup %1821  ;;  %1384 = vst [vmem:[%s2057_s7 + $0x10] sm:$0xff] %v1820_v25 }
 0x2f2   :  { %v1824_v26 = vpop.eup %1823  ;;  %1383 = vst [vmem:[%s2057_s7 + $0x8] sm:$0xff] %v1822_v19 }
 0x2f3   :  { %1385 = vst [vmem:[%s2057_s7 + $0x18] sm:$0xff] %v1824_v26 }
 0x302   :  { %v1571_v28 = vpop.f32.mrb[8].mxu1 }
 0x303   :  { %v1572_v30 = vpop.f32.mrb[9].mxu1 }
 0x304   :  { %v1573_v31 = vadd.f32 %v1572_v30, %v1571_v28  ;;  %v1574_v32 = vpop.f32.mrb[10].mxu1 }
 0x305   :  { %v1575_v33 = vpop.f32.mrb[11].mxu1 }
 0x306   :  { %v1370_v34 = vadd.f32 %v1573_v31, %v628_v29 }
 0x308   :  { %1825 = vtanh.f32 %v1370_v34 }
 0x312   :  { %v1826_v35 = vpop.eup %1825 }
 0x313   :  { %1388 = vst [vmem:[%s2057_s7 + $0x30] sm:$0xff] %v1826_v35 }
 0x322   :  { %v1328_v40 = vpop.f32.mrb[8].mxu0 }
 0x323   :  { %v1329_v41 = vadd.f32 %v1328_v40, %v620_v38  ;;  %v1330_v42 = vpop.f32.mrb[9].mxu0 }
 0x324   :  { %v1331_v43 = vadd.f32 %v1330_v42, %v624_v39  ;;  %v1332_v44 = vpop.f32.mrb[10].mxu0 }
 0x325   :  { %1827 = vtanh.f32 %v1329_v41  ;;  %v1333_v45 = vpop.f32.mrb[11].mxu0 }
 0x326   :  { %1829 = vtanh.f32 %v1331_v43 }
 0x32f   :  { %v1828_v46 = vpop.eup %1827 }
 0x330   :  { %v1830_v47 = vpop.eup %1829  ;;  %1386 = vst [vmem:[%s2057_s7 + $0x20] sm:$0xff] %v1828_v46 }
 0x331   :  { %1387 = vst [vmem:[%s2057_s7 + $0x28] sm:$0xff] %v1830_v47 }
 0x332   :  { %1393 = vsyncpa [#allocation3], 1 }
 0x333   :  { %1394 = vsyncpa [#allocation5], 1 }

</bundles_post_ra>
